<compile_context>
chip_gen: v7x
topology: tpu7x:2x2x1
jax: 0.10.0
libtpu: 0.0.40
codegen_flags: <defaults>
</compile_context>

<pallas_src>
import functools

import jax
import jax.numpy as jnp
from jax.experimental import pallas as pl
from jax.experimental.pallas import tpu as pltpu


def _masked_bce_kernel(pred_ref, gt_ref, mask_ref, sum_ref, cnt_ref,
                       *, tk, w_out, hw, n_k, needs_col_mask):
    c = pl.program_id(1)   # spatial chunk (parallel)
    k = pl.program_id(2)   # spatial step within chunk (arbitrary / accumulated)

    @pl.when(k == 0)
    def _():
        sum_ref[...] = jnp.zeros_like(sum_ref)
        cnt_ref[...] = jnp.zeros_like(cnt_ref)

    x = pred_ref[...].astype(jnp.float32)
    z = gt_ref[...].astype(jnp.float32)
    m = mask_ref[...]
    if m.dtype != jnp.bool_:
        m = m != 0

    # Numerically stable BCEWithLogits (same formula PyTorch uses):
    #   max(x, 0) - x*z + log(1 + exp(-|x|))
    bce = jnp.maximum(x, 0.0) - x * z + jnp.log1p(jnp.exp(-jnp.abs(x)))

    if needs_col_mask:
        # Ragged / fully-out-of-range spatial blocks: kill garbage columns.
        col0 = (c * n_k + k) * tk
        cols = col0 + jax.lax.broadcasted_iota(jnp.int32, x.shape, 1)
        m = jnp.logical_and(m, cols < hw)

    bce = jnp.where(m, bce, 0.0)          # robust masking (no 0*inf / NaN leak)
    mf = m.astype(jnp.float32)

    # Lane-group accumulation: VALU-only adds into w_out-wide accumulators.
    # The single cross-lane reduce happens on tiny arrays in the wrapper.
    n_groups = tk // w_out
    bsum = bce[:, :w_out]
    msum = mf[:, :w_out]
    for g in range(1, n_groups):
        sl = slice(g * w_out, (g + 1) * w_out)
        bsum = bsum + bce[:, sl]
        msum = msum + mf[:, sl]

    sum_ref[...] += bsum
    cnt_ref[...] += msum


def masked_bce_loss(pred, gt, mask):
    """pred, gt: (B, C, H, W) float (f32 or bf16); mask: (B, C, H, W) bool.
    Returns scalar f32 loss (same semantics as the PyTorch MaskedBCELoss)."""
    B, C, H, W = pred.shape
    n_rows = B * C
    hw = H * W

    # Free, contiguous reshapes. No padding, no dtype-conversion HBM passes.
    pred2 = pred.reshape(n_rows, hw)
    gt2 = gt.reshape(n_rows, hw)
    mask2 = mask.reshape(n_rows, hw)

    # ---- spatial (lane) tiling ------------------------------------------
    LANE = 128
    TK_MAX = 4096
    if hw >= LANE:
        TK = min(TK_MAX, (hw // LANE) * LANE)   # multiple of 128, <= hw
    else:
        TK = hw                                  # single full-width block
    W_OUT = min(TK, LANE)
    hw_blocks = pl.cdiv(hw, TK)

    # ---- row (sublane) tiling --------------------------------------------
    TR_MAX = 256
    if n_rows <= TR_MAX:
        TR = n_rows           # full-dim block: no padded-row traffic
        g_r = 1
    else:
        TR = TR_MAX
        g_r = pl.cdiv(n_rows, TR)

    # Guarantee >=2 "parallel" blocks (v7x has 2 TensorCores) when possible.
    g_c = 2 if (g_r == 1 and hw_blocks >= 2) else 1
    n_k = pl.cdiv(hw_blocks, g_c)
    needs_col_mask = (g_c * n_k * TK) != hw
    last_blk = hw_blocks - 1

    def in_idx(i, c, k):
        # Clamp fully-out-of-range steps of the last chunk; the kernel's column
        # mask zeroes their contribution, so the re-read block is harmless.
        return (i, jnp.minimum(c * n_k + k, last_blk))

    def out_idx(i, c, k):
        return (i, c)

    total_steps = g_r * g_c * n_k
    pm = pl.Buffered(3) if total_steps >= 3 else None   # deeper pipelining

    kernel = functools.partial(
        _masked_bce_kernel, tk=TK, w_out=W_OUT, hw=hw, n_k=n_k,
        needs_col_mask=needs_col_mask)

    sums, cnts = pl.pallas_call(
        kernel,
        out_shape=(
            jax.ShapeDtypeStruct((n_rows, g_c * W_OUT), jnp.float32),
            jax.ShapeDtypeStruct((n_rows, g_c * W_OUT), jnp.float32),
        ),
        grid_spec=pltpu.PrefetchScalarGridSpec(
            num_scalar_prefetch=0,
            grid=(g_r, g_c, n_k),
            in_specs=[
                pl.BlockSpec((TR, TK), in_idx, pipeline_mode=pm),   # pred
                pl.BlockSpec((TR, TK), in_idx, pipeline_mode=pm),   # gt
                pl.BlockSpec((TR, TK), in_idx, pipeline_mode=pm),   # mask (bool)
            ],
            out_specs=[
                pl.BlockSpec((TR, W_OUT), out_idx),   # per-row lane partial sums
                pl.BlockSpec((TR, W_OUT), out_idx),   # per-row lane partial counts
            ],
        ),
        compiler_params=pltpu.CompilerParams(
            dimension_semantics=("parallel", "parallel", "arbitrary"),
            # ~27 MiB worst-case triple-buffered working set at TR=256, TK=4096;
            # 48 MiB fits v7x's 64 MiB physical VMEM and overrides the small
            # default scoped limits on v5e/v6e.
            vmem_limit_bytes=48 * 1024 * 1024,
        ),
    )(pred2, gt2, mask2)

    # Tiny final reduction in the wrapper (n_rows x g_c*128 floats).
    row_sum = jnp.sum(sums, axis=-1)
    row_cnt = jnp.sum(cnts, axis=-1)
    return jnp.mean(row_sum / jnp.maximum(row_cnt, 1.0))


def _reference(pred, gt, mask):
    x = pred.astype(jnp.float32)
    z = gt.astype(jnp.float32)
    bce = jnp.maximum(x, 0.0) - x * z + jnp.log1p(jnp.exp(-jnp.abs(x)))
    bce = jnp.where(mask, bce, 0.0)
    B, C, H, W = pred.shape
    bce = bce.reshape(B, C, -1)
    mf = mask.reshape(B, C, -1).astype(jnp.float32)
    counts = jnp.maximum(mf.sum(-1), 1.0)
    return (bce.sum(-1) / counts).mean()


if __name__ == "__main__":
    key = jax.random.PRNGKey(0)
    k1, k2, k3 = jax.random.split(key, 3)

    # Primary small test (shapes implied by the module's NCHW contract).
    B, C, H, W = 2, 4, 16, 16
    pred = jax.random.normal(k1, (B, C, H, W), dtype=jnp.float32)
    gt = (jax.random.uniform(k2, (B, C, H, W)) > 0.5).astype(jnp.float32)
    mask = jax.random.uniform(k3, (B, C, H, W)) > 0.3  # bool mask

    out = jax.block_until_ready(masked_bce_loss(pred, gt, mask))
    ref = _reference(pred, gt, mask)
    assert jnp.allclose(out, ref, atol=1e-5, rtol=1e-5), (out, ref)

    # Odd, non-aligned shape: exercises the in-kernel ragged-edge masking and
    # the two-chunk parallel split (replaces the old jnp.pad path).
    k4, k5, k6 = jax.random.split(jax.random.PRNGKey(0), 3)
    B2, C2, H2, W2 = 1, 3, 17, 15
    pred_b = jax.random.normal(k4, (B2, C2, H2, W2), dtype=jnp.float32)
    gt_b = (jax.random.uniform(k5, (B2, C2, H2, W2)) > 0.5).astype(jnp.float32)
    mask_b = jax.random.uniform(k6, (B2, C2, H2, W2)) > 0.3

    out_b = jax.block_until_ready(masked_bce_loss(pred_b, gt_b, mask_b))
    ref_b = _reference(pred_b, gt_b, mask_b)
    assert jnp.allclose(out_b, ref_b, atol=1e-5, rtol=1e-5), (out_b, ref_b)

    print("KERNEL_OK")
</pallas_src>

<mosaic_0001>
module attributes {stable_mosaic.version = 11 : i64} {
  func.func @_masked_bce_kernel(%arg0: i32, %arg1: i32, %arg2: i32, %arg3: memref<8x256xf32, #tpu.memory_space<vmem>>, %arg4: memref<8x256xf32, #tpu.memory_space<vmem>>, %arg5: memref<8x256xi32, #tpu.memory_space<vmem>>, %arg6: memref<8x128xf32, #tpu.memory_space<vmem>>, %arg7: memref<8x128xf32, #tpu.memory_space<vmem>>) attributes {dimension_semantics = [#tpu.dimension_semantics<parallel>, #tpu.dimension_semantics<parallel>, #tpu.dimension_semantics<arbitrary>], iteration_bounds = array<i64: 1, 1, 1>, scalar_prefetch = 0 : i64, scratch_operands = 0 : i64, tpu.core_type = #tpu.core_type<tc>, window_params = [{transform_indices = @transform_0, window_bounds = array<i64: 8, 256>}, {transform_indices = @transform_1, window_bounds = array<i64: 8, 256>}, {transform_indices = @transform_2, window_bounds = array<i64: 8, 256>}, {transform_indices = @transform_3, window_bounds = array<i64: 8, 128>}, {transform_indices = @transform_4, window_bounds = array<i64: 8, 128>}]} {
    %c0_i32 = arith.constant 0 : i32
    %0 = arith.cmpi eq, %arg2, %c0_i32 : i32
    %1 = arith.extui %0 : i1 to i32
    %c0_i32_0 = arith.constant 0 : i32
    %2 = arith.cmpi ne, %1, %c0_i32_0 : i32
    scf.if %2 {
      %cst_17 = arith.constant 0.000000e+00 : f32
      %33 = vector.broadcast %cst_17 : f32 to vector<8x128xf32>
      %c0_18 = arith.constant 0 : index
      %c0_19 = arith.constant 0 : index
      %34 = vector.load %arg6[%c0_18, %c0_19] : memref<8x128xf32, #tpu.memory_space<vmem>>, vector<8x128xf32>
      tpu.vector_store %arg6[%c0_18, %c0_19], %33 {strides = array<i32>} : memref<8x128xf32, #tpu.memory_space<vmem>>, vector<8x128xf32>,
      %cst_20 = arith.constant 0.000000e+00 : f32
      %35 = vector.broadcast %cst_20 : f32 to vector<8x128xf32>
      %c0_21 = arith.constant 0 : index
      %c0_22 = arith.constant 0 : index
      %36 = vector.load %arg7[%c0_21, %c0_22] : memref<8x128xf32, #tpu.memory_space<vmem>>, vector<8x128xf32>
      tpu.vector_store %arg7[%c0_21, %c0_22], %35 {strides = array<i32>} : memref<8x128xf32, #tpu.memory_space<vmem>>, vector<8x128xf32>,
    } else {
    }
    %c0 = arith.constant 0 : index
    %c0_1 = arith.constant 0 : index
    %3 = vector.load %arg3[%c0, %c0_1] : memref<8x256xf32, #tpu.memory_space<vmem>>, vector<8x256xf32>
    %c0_2 = arith.constant 0 : index
    %c0_3 = arith.constant 0 : index
    %4 = vector.load %arg4[%c0_2, %c0_3] : memref<8x256xf32, #tpu.memory_space<vmem>>, vector<8x256xf32>
    %c0_4 = arith.constant 0 : index
    %c0_5 = arith.constant 0 : index
    %5 = vector.load %arg5[%c0_4, %c0_5] : memref<8x256xi32, #tpu.memory_space<vmem>>, vector<8x256xi32>
    %cst = arith.constant dense<0> : vector<8x256xi32>
    %6 = arith.cmpi ne, %5, %cst : vector<8x256xi32>
    %cst_6 = arith.constant 0.000000e+00 : f32
    %7 = vector.broadcast %cst_6 : f32 to vector<8x256xf32>
    %8 = arith.maximumf %3, %7 : vector<8x256xf32>
    %9 = arith.mulf %3, %4 : vector<8x256xf32>
    %10 = arith.subf %8, %9 : vector<8x256xf32>
    %11 = math.absf %3 : vector<8x256xf32>
    %cst_7 = arith.constant 0.000000e+00 : f32
    %12 = vector.broadcast %cst_7 : f32 to vector<8x256xf32>
    %13 = arith.subf %12, %11 : vector<8x256xf32>
    %14 = math.exp %13 : vector<8x256xf32>
    %15 = math.log1p %14 : vector<8x256xf32>
    %16 = arith.addf %10, %15 : vector<8x256xf32>
    %cst_8 = arith.constant 0.000000e+00 : f32
    %17 = vector.broadcast %cst_8 : f32 to vector<8x256xf32>
    %18 = arith.select %6, %16, %17 : vector<8x256xi1>, vector<8x256xf32>
    %19 = arith.extui %6 : vector<8x256xi1> to vector<8x256xi32>
    %20 = arith.sitofp %19 : vector<8x256xi32> to vector<8x256xf32>
    %21 = vector.extract_strided_slice %18 {offsets = [0, 0], sizes = [8, 128], strides = [1, 1]} : vector<8x256xf32> to vector<8x128xf32>
    %22 = vector.extract_strided_slice %20 {offsets = [0, 0], sizes = [8, 128], strides = [1, 1]} : vector<8x256xf32> to vector<8x128xf32>
    %23 = vector.extract_strided_slice %18 {offsets = [0, 128], sizes = [8, 128], strides = [1, 1]} : vector<8x256xf32> to vector<8x128xf32>
    %24 = arith.addf %21, %23 : vector<8x128xf32>
    %25 = vector.extract_strided_slice %20 {offsets = [0, 128], sizes = [8, 128], strides = [1, 1]} : vector<8x256xf32> to vector<8x128xf32>
    %26 = arith.addf %22, %25 : vector<8x128xf32>
    %c0_9 = arith.constant 0 : index
    %c0_10 = arith.constant 0 : index
    %27 = vector.load %arg6[%c0_9, %c0_10] : memref<8x128xf32, #tpu.memory_space<vmem>>, vector<8x128xf32>
    %28 = arith.addf %27, %24 : vector<8x128xf32>
    %c0_11 = arith.constant 0 : index
    %c0_12 = arith.constant 0 : index
    %29 = vector.load %arg6[%c0_11, %c0_12] : memref<8x128xf32, #tpu.memory_space<vmem>>, vector<8x128xf32>
    tpu.vector_store %arg6[%c0_11, %c0_12], %28 {strides = array<i32>} : memref<8x128xf32, #tpu.memory_space<vmem>>, vector<8x128xf32>,
    %c0_13 = arith.constant 0 : index
    %c0_14 = arith.constant 0 : index
    %30 = vector.load %arg7[%c0_13, %c0_14] : memref<8x128xf32, #tpu.memory_space<vmem>>, vector<8x128xf32>
    %31 = arith.addf %30, %26 : vector<8x128xf32>
    %c0_15 = arith.constant 0 : index
    %c0_16 = arith.constant 0 : index
    %32 = vector.load %arg7[%c0_15, %c0_16] : memref<8x128xf32, #tpu.memory_space<vmem>>, vector<8x128xf32>
    tpu.vector_store %arg7[%c0_15, %c0_16], %31 {strides = array<i32>} : memref<8x128xf32, #tpu.memory_space<vmem>>, vector<8x128xf32>,
    return
  }
  func.func @transform_0(%arg0: i32, %arg1: i32, %arg2: i32) -> (i32, i32) {
    %c1_i32 = arith.constant 1 : i32
    %0 = arith.muli %arg1, %c1_i32 : i32
    %1 = arith.addi %0, %arg2 : i32
    %c0_i32 = arith.constant 0 : i32
    %2 = arith.minsi %1, %c0_i32 : i32
    %c0_i32_0 = arith.constant 0 : i32
    return %arg0, %2 : i32, i32
  }
  func.func @transform_1(%arg0: i32, %arg1: i32, %arg2: i32) -> (i32, i32) {
    %c1_i32 = arith.constant 1 : i32
    %0 = arith.muli %arg1, %c1_i32 : i32
    %1 = arith.addi %0, %arg2 : i32
    %c0_i32 = arith.constant 0 : i32
    %2 = arith.minsi %1, %c0_i32 : i32
    %c0_i32_0 = arith.constant 0 : i32
    return %arg0, %2 : i32, i32
  }
  func.func @transform_2(%arg0: i32, %arg1: i32, %arg2: i32) -> (i32, i32) {
    %c1_i32 = arith.constant 1 : i32
    %0 = arith.muli %arg1, %c1_i32 : i32
    %1 = arith.addi %0, %arg2 : i32
    %c0_i32 = arith.constant 0 : i32
    %2 = arith.minsi %1, %c0_i32 : i32
    %c0_i32_0 = arith.constant 0 : i32
    return %arg0, %2 : i32, i32
  }
  func.func @transform_3(%arg0: i32, %arg1: i32, %arg2: i32) -> (i32, i32) {
    %c0_i32 = arith.constant 0 : i32
    return %arg0, %arg1 : i32, i32
  }
  func.func @transform_4(%arg0: i32, %arg1: i32, %arg2: i32) -> (i32, i32) {
    %c0_i32 = arith.constant 0 : i32
    return %arg0, %arg1 : i32, i32
  }
}

</mosaic_0001>

<bundles_post_ra>
// kernel: tpu_custom_call.1
= control target key start
LH: loop header
LB: loop body
LE: loop exit
PB: predicated region body
PF: predicated region fallthrough
CT: control target
= control target key end

     0   :  { %10 = vsyncpa [#allocation3], 0  ;;  %s386_s0 = inlined_call_operand.vmem [shape: f32[8,256], index: 0, kind: input, shape index: {}]   ;;  %s387_s1 = inlined_call_operand.hbm [shape: f32[8,256], index: 1, kind: input, shape index: {}]   ;;  %s388_s2 = inlined_call_operand.vmem [shape: s32[8,256], index: 2, kind: input, shape index: {}]   ;;  %s389_s3 = inlined_call_operand.hbm [shape: f32[8,128], index: 3, kind: output, shape index: {0}]   ;;  %s390_s4 = inlined_call_operand.hbm [shape: f32[8,128], index: 4, kind: output, shape index: {1}]  }
   0x1   :  { %11 = vsyncpa [#allocation4], 0 }
   0x2   :  { %12 = vsyncpa [#allocation7], 0  ;;  %s295_s15 = smov [#allocation2]   ;;  %s223_s19 = scalar_lea.hbm %s387_s1, 256 }
   0x3   :  { %s39_s16 = sshll.u32 %s295_s15, 4  ;;  %p224_p0 = scmp.ne.s32.totalorder %s387_s1, %s223_s19  ;;  %s40_s16 = int_to_ptr.vmem [resolvable:$true] %s39_s16 }
   0x4   :  { %p227_p1 = scmp.lt.u32.totalorder %s223_s19, %s387_s1 }
   0x6   :  { %p229_p2 = pnand %p227_p1, %p224_p0 }
   0x8   :  { %232 = shalt.err (!%p229_p2)
}
   0x9   :  { %s233_s24 = scalar_lea.vmem %s40_s16, 256  ;;  %p238_p4 = scmp.lt.s32.totalorder %s40_s16, %s40_s16 }
   0xa   :  { %p234_p3 = scmp.ne.s32.totalorder %s40_s16, %s233_s24  ;;  %p239_p5 = scmp.lt.s32.totalorder %s233_s24, %s233_s24 }
   0xc   :  { %p240_p6 = por %p239_p5, %p238_p4 }
   0xe   :  { %p241_p7 = pnand %p240_p6, %p234_p3 }
  0x10   :  { %244 = shalt.err (!%p241_p7)
}
  0x11   :  { %42 = dma.hbm_to_vmem [thread:$0]  %s387_s1, 256, %s40_s16, [#allocation3]  }
  0x12   :  { %289 = dma.done.wait [#allocation3], 256  }
  0x13   :  { %290 = vsyncadd [#allocation3], 4294967040  ;;  %v110_v0 = vld [vmem:[%s386_s0] sm:$0xff]  ;;  %v111_v1 = vld [vmem:[%s386_s0 + $0x8] sm:$0xff]  ;;  %v296_v6 = vmov 0.0   ;;  %s297_s0 = smov [#allocation6]  }
  0x14   :  { %v345_v2 = vld [vmem:[%s388_s2] sm:$0xff]  ;;  %v350_v3 = vld [vmem:[%s388_s2 + $0x8] sm:$0xff]  ;;  %v124_v4 = vand.u32 2147483647, %v110_v0  ;;  %v125_v5 = vand.u32 2147483647, %v111_v1 }
  0x15   :  { %vm116_vm0 = vcmp.ne.s32.totalorder %v345_v2, 0  ;;  %vm117_vm1 = vcmp.ne.s32.totalorder %v350_v3, 0  ;;  %s182_s1 = sshll.u32 %s297_s0, 4  ;;  %s183_s1 = int_to_ptr.vmem [resolvable:$true] %s182_s1 }
  0x16   :  { %v209_v7 = vsel %vm116_vm0, 1.0, %v296_v6  ;;  %v210_v8 = vsel %vm117_vm1, 1.0, %v296_v6  ;;  %v126_v9 = vsub.f32 0.0, %v124_v4  ;;  %v127_v11 = vsub.f32 0.0, %v125_v5  ;;  %s245_s2 = scalar_lea.vmem %s183_s1, 128  ;;  %p250_p9 = scmp.lt.s32.totalorder %s183_s1, %s183_s1 }
  0x17   :  { %v159_v10 = vadd.f32 %v210_v8, %v209_v7  ;;  %p246_p8 = scmp.ne.s32.totalorder %s183_s1, %s245_s2  ;;  %p251_p10 = scmp.lt.s32.totalorder %s245_s2, %s245_s2 }
  0x18   :  { %v128_v12 = vmul.f32 1.442695, %v126_v9  ;;  %v130_v13 = vmul.f32 1.442695, %v127_v11 }
  0x19   :  { %165 = vst [vmem:[#allocation6] sm:$0xff] %v159_v10  ;;  %p252_p11 = por %p251_p10, %p250_p9 }
  0x1a   :  { %215 = vpow2.f32 %v128_v12 }
  0x1b   :  { %217 = vpow2.f32 %v130_v13  ;;  %p253_p12 = pnand %p252_p11, %p246_p8 }
  0x1d   :  { %256 = shalt.err (!%p253_p12)
}
  0x1e   :  { %s257_s11 = scalar_lea.hbm %s390_s4, 128 }
  0x1f   :  { %p258_p13 = scmp.ne.s32.totalorder %s390_s4, %s257_s11  ;;  %p261_p0 = scmp.lt.u32.totalorder %s257_s11, %s390_s4 }
  0x21   :  { %p263_p1 = pnand %p261_p0, %p258_p13 }
  0x23   :  { %266 = shalt.err (!%p263_p1)
}
  0x24   :  { %185 = dma.vmem_to_hbm [thread:$0]  %s183_s1, 128, %s390_s4, [#allocation7]   ;;  %v216_v14 = vpop.eup %215  ;;  %v112_v20 = vld [vmem:[#allocation2] sm:$0xff]  ;;  %v113_v21 = vld [vmem:[#allocation2 + $0x8] sm:$0xff]  ;;  %v118_v23 = vmax.f32 %v110_v0, 0.0  ;;  %v119_v27 = vmax.f32 %v111_v1, 0.0 }
  0x25   :  { %v218_v15 = vpop.eup %217  ;;  %v132_v16 = vadd.f32 1.0, %v216_v14  ;;  %v135_v18 = vmul.f32 -0.5, %v216_v14  ;;  %v120_v24 = vmul.f32 %v112_v20, %v110_v0  ;;  %v138_v25 = vand.u32 2147483647, %v216_v14  ;;  %s298_s4 = smov [#allocation5]  }
  0x26   :  { %v141_v17 = vadd.f32 1.0, %v218_v15  ;;  %v144_v19 = vmul.f32 -0.5, %v218_v15  ;;  %v121_v28 = vmul.f32 %v113_v21, %v111_v1  ;;  %v147_v29 = vand.u32 2147483647, %v218_v15  ;;  %s172_s18 = sshll.u32 %s298_s4, 4  ;;  %s173_s18 = int_to_ptr.vmem [resolvable:$true] %s172_s18 }
  0x27   :  { %219 = vlog2.f32 %v132_v16  ;;  %v136_v22 = vadd.f32 1.0, %v135_v18  ;;  %v122_v32 = vsub.f32 %v118_v23, %v120_v24  ;;  %vm139_vm2 = vcmp.lt.f32.partialorder %v138_v25, 0.0004427343  ;;  %s267_s19 = scalar_lea.vmem %s173_s18, 128  ;;  %p272_p3 = scmp.lt.s32.totalorder %s173_s18, %s173_s18 }
  0x28   :  { %221 = vlog2.f32 %v141_v17  ;;  %v145_v26 = vadd.f32 1.0, %v144_v19  ;;  %v123_v35 = vsub.f32 %v119_v27, %v121_v28  ;;  %vm148_vm3 = vcmp.lt.f32.partialorder %v147_v29, 0.0004427343  ;;  %p268_p2 = scmp.ne.s32.totalorder %s173_s18, %s267_s19  ;;  %p273_p4 = scmp.lt.s32.totalorder %s267_s19, %s267_s19 }
  0x29   :  { %v137_v30 = vmul.f32 %v216_v14, %v136_v22 }
  0x2a   :  { %v146_v33 = vmul.f32 %v218_v15, %v145_v26  ;;  %p274_p5 = por %p273_p4, %p272_p3 }
  0x2c   :  { %p275_p6 = pnand %p274_p5, %p268_p2 }
  0x31   :  { %v220_v31 = vpop.eup %219 }
  0x32   :  { %v222_v34 = vpop.eup %221  ;;  %v134_v36 = vmul.f32 0.6931472, %v220_v31 }
  0x33   :  { %v143_v37 = vmul.f32 0.6931472, %v222_v34 }
  0x34   :  { %v140_v38 = vsel %vm139_vm2, %v137_v30, %v134_v36 }
  0x35   :  { %v149_v39 = vsel %vm148_vm3, %v146_v33, %v143_v37  ;;  %v150_v40 = vadd.f32 %v140_v38, %v122_v32 }
  0x36   :  { %v151_v41 = vadd.f32 %v149_v39, %v123_v35 }
  0x37   :  { %v152_v42 = vsel %vm116_vm0, %v150_v40, 0.0 }
  0x38   :  { %v153_v43 = vsel %vm117_vm1, %v151_v41, 0.0 }
  0x39   :  { %v158_v44 = vadd.f32 %v153_v43, %v152_v42 }
  0x3b   :  { %162 = vst [vmem:[#allocation5] sm:$0xff] %v158_v44 }
  0x3c   :  { %278 = shalt.err (!%p275_p6)
}
  0x3d   :  { %s279_s22 = scalar_lea.hbm %s389_s3, 128 }
  0x3e   :  { %p280_p7 = scmp.ne.s32.totalorder %s389_s3, %s279_s22  ;;  %p283_p8 = scmp.lt.u32.totalorder %s279_s22, %s389_s3 }
  0x40   :  { %p285_p9 = pnand %p283_p8, %p280_p7 }
  0x42   :  { %288 = shalt.err (!%p285_p9)
}
  0x43   :  { %175 = dma.vmem_to_hbm [thread:$0]  %s173_s18, 128, %s389_s3, [#allocation4]  }
  0x44   :  { %291 = dma.done.wait [#allocation4], 128  }
  0x45   :  { %292 = vsyncadd [#allocation4], 4294967168 }
  0x46   :  { %293 = dma.done.wait [#allocation7], 128  }
  0x47   :  { %294 = vsyncadd [#allocation7], 4294967168 }
  0x48   :  { %192 = vsyncpa [#allocation3], 1 }
  0x49   :  { %193 = vsyncpa [#allocation4], 1 }
  0x4a   :  { %194 = vsyncpa [#allocation7], 1 }

</bundles_post_ra>
